<compile_context>
chip_gen: v6e
topology: v6e:2x2x1
jax: 0.10.0
libtpu: 0.0.40
codegen_flags: <defaults>
</compile_context>

<pallas_src>
import functools
import math

import jax
import jax.numpy as jnp
from jax.experimental import pallas as pl
from jax.experimental.pallas import tpu as pltpu


def _round_up(a, b):
    return ((a + b - 1) // b) * b


def _encoder_block_kernel(xa_ref, xb_ref, w_ref, p_ref, out_ref, *,
                          eps, q_taps, gelu_approx):
    # xa_ref : (sC, TT)           current time tile, channel-major groups
    # xb_ref : (sC, 128)          halo: first 128 groups of the next tile
    # w_ref  : (C_out, q_taps*sC) fused conv weights (resident)
    # p_ref  : (C_out, 3)         [conv_bias | ln_gamma | ln_beta], f32 (resident)
    # out_ref: (C_out, TT)        channel-major output tile
    tt = xa_ref.shape[1]
    xa = xa_ref[...]

    if q_taps > 1:
        # Lane-aligned concat (both pieces are multiples of 128 lanes wide);
        # the q >= 1 slices are the only (small, bf16) lane re-alignments.
        buf = jnp.concatenate([xa, xb_ref[...]], axis=1)          # (sC, TT+128)
        x_op = jnp.concatenate([buf[:, q:q + tt] for q in range(q_taps)],
                               axis=0)                            # (Q*sC, TT)
    else:
        x_op = xa

    # Single fused matmul: contraction depth Q*sC, output already (C_out, TT).
    y = jnp.dot(w_ref[...], x_op, preferred_element_type=jnp.float32)
    y = y + p_ref[:, 0:1]                                         # conv bias

    if gelu_approx:
        y = jax.nn.gelu(y, approximate=True)                      # EUP tanh path
    else:
        inv_sqrt2 = jnp.float32(1.0 / math.sqrt(2.0))
        y = 0.5 * y * (1.0 + jax.lax.erf(y * inv_sqrt2))          # exact GELU

    # LayerNorm over channels (sublane axis), single fused statistics pass.
    inv_c = jnp.float32(1.0 / y.shape[0])
    mean = jnp.sum(y, axis=0, keepdims=True) * inv_c
    mean_sq = jnp.sum(y * y, axis=0, keepdims=True) * inv_c
    var = jnp.maximum(mean_sq - mean * mean, 0.0)
    y = (y - mean) * jax.lax.rsqrt(var + jnp.float32(eps))
    y = y * p_ref[:, 1:2] + p_ref[:, 2:3]                         # gamma, beta

    out_ref[...] = y.astype(out_ref.dtype)


def encoder_block(x, conv_weight, conv_bias, ln_gamma, ln_beta, *,
                  kernel_size=8, stride=4, padding=2, eps=1e-5,
                  compute_dtype=jnp.bfloat16, out_dtype=None,
                  time_tile=512, gelu_approx=False):
    """x: (B, C_in, T) float32 -> (B, C_out, T_out) out_dtype (default x.dtype)."""
    B, C_in, T = x.shape
    C_out = conv_weight.shape[0]
    K, s, p = kernel_size, stride, padding
    assert T + 2 * p >= K, "input too short for this conv"
    out_dtype = x.dtype if out_dtype is None else out_dtype

    T_out = (T + 2 * p - K) // s + 1
    Q = -(-K // s)                       # shifted-matmul taps; pad K up to Q*s
    K_pad = Q * s
    sC = s * C_in
    sC_pad = _round_up(sC, 8)
    HB = 128                             # halo block width (lane aligned)

    # --- time tiling: lane-dense (multiple of 128) output tiles --------------
    TT = min(_round_up(T_out, 128), _round_up(max(time_tile, 128), 128))
    n_t = pl.cdiv(T_out, TT)
    if B * n_t < 2 and TT > 128:         # keep both v7x TensorCores busy
        TT = _round_up(pl.cdiv(T_out, 2), 128)
        n_t = pl.cdiv(T_out, TT)
    T_out_pad = n_t * TT
    tt_blocks = TT // HB

    # --- grouped, channel-major input (one fused pad/reshape/transpose) ------
    G_pad = _round_up(max(T_out_pad + HB, -(-(T + 2 * p) // s)), HB)
    L = G_pad * s
    x_pad = jnp.pad(x, ((0, 0), (0, 0), (p, L - T - p)))          # (B, C_in, L)
    x_r = jnp.transpose(x_pad.reshape(B, C_in, G_pad, s), (0, 3, 1, 2))
    x_r = x_r.reshape(B, sC, G_pad)                               # row = r*C_in+c
    if sC_pad != sC:
        x_r = jnp.pad(x_r, ((0, 0), (0, sC_pad - sC), (0, 0)))
    x_r = x_r.astype(compute_dtype)                               # (B, sC_pad, G)

    # --- fused conv weights: Wf[o, q*sC_pad + r*C_in + c] = W[o, c, q*s + r] --
    w = jnp.pad(conv_weight, ((0, 0), (0, 0), (0, K_pad - K)))
    w = jnp.transpose(w.reshape(C_out, C_in, Q, s), (2, 3, 1, 0)).reshape(Q, sC, C_out)
    if sC_pad != sC:
        w = jnp.pad(w, ((0, 0), (0, sC_pad - sC), (0, 0)))
    w = jnp.transpose(w, (2, 0, 1)).reshape(C_out, Q * sC_pad).astype(compute_dtype)

    # bias / gamma / beta merged into one resident operand.
    params = jnp.stack([conv_bias, ln_gamma, ln_beta], axis=1).astype(jnp.float32)

    # --- scheduling hints -----------------------------------------------------
    itemsize = jnp.dtype(compute_dtype).itemsize
    out_isz = jnp.dtype(out_dtype).itemsize
    flops = 2 * B * n_t * TT * (Q * sC_pad) * C_out
    transcendentals = B * n_t * TT * C_out
    bytes_accessed = (B * sC_pad * (T_out_pad + n_t * HB) * itemsize
                      + C_out * Q * sC_pad * itemsize + C_out * 3 * 4
                      + B * C_out * T_out_pad * out_isz)

    need = (2 * sC_pad * TT * itemsize                 # input tile (dbl-buffered)
            + 2 * sC_pad * HB * itemsize               # halo tile
            + 2 * C_out * TT * out_isz                 # output tile
            + 2 * (C_out * Q * sC_pad * itemsize + C_out * 128 * 4)  # residents
            + (Q + 1) * sC_pad * (TT + HB) * itemsize  # operand temporaries
            + 6 * C_out * TT * 4)                      # f32 temporaries
    try:  # derive VMEM cap from hardware with ~25% headroom (48 MiB on v7x).
        cap = int(pltpu.get_tpu_info().vmem_capacity_bytes)
    except Exception:
        cap = 64 * 1024 * 1024
    vmem_limit = int(min(max(2 * need, 32 * 1024 * 1024), (cap * 3) // 4))

    out = pl.pallas_call(
        functools.partial(_encoder_block_kernel, eps=eps, q_taps=Q,
                          gelu_approx=gelu_approx),
        out_shape=jax.ShapeDtypeStruct((B, C_out, T_out_pad), out_dtype),
        grid=(B, n_t),
        in_specs=[
            # main time tile (TT groups, channel-major)
            pl.BlockSpec((None, sC_pad, TT), lambda b, i: (b, 0, i)),
            # halo: first 128 groups of the next tile (shifted taps)
            pl.BlockSpec((None, sC_pad, HB),
                         lambda b, i: (b, 0, (i + 1) * tt_blocks)),
            # resident fused weights and merged bias/gamma/beta
            pl.BlockSpec((C_out, Q * sC_pad), lambda b, i: (0, 0)),
            pl.BlockSpec((C_out, 3), lambda b, i: (0, 0)),
        ],
        out_specs=pl.BlockSpec((None, C_out, TT), lambda b, i: (b, 0, i)),
        compiler_params=pltpu.CompilerParams(
            dimension_semantics=("parallel", "parallel"),
            vmem_limit_bytes=vmem_limit),
        cost_estimate=pl.CostEstimate(flops=flops,
                                      transcendentals=transcendentals,
                                      bytes_accessed=bytes_accessed),
    )(x_r, x_r, w, params)

    if T_out_pad != T_out:
        out = out[:, :, :T_out]
    return out


def _reference(x, conv_weight, conv_bias, ln_gamma, ln_beta, *,
               kernel_size, stride, padding, eps=1e-5, cast_dtype=None):
    """Plain-JAX reference (im2col conv + exact GELU + LayerNorm)."""
    B, C_in, T = x.shape
    C_out = conv_weight.shape[0]
    K, s, p = kernel_size, stride, padding
    T_out = (T + 2 * p - K) // s + 1
    x_pad = jnp.pad(x, ((0, 0), (0, 0), (p, p)))
    idx = jnp.arange(T_out)[:, None] * s + jnp.arange(K)[None, :]
    patches = jnp.transpose(x_pad[:, :, idx], (0, 2, 1, 3)).reshape(
        B * T_out, C_in * K)
    w2 = conv_weight.reshape(C_out, C_in * K).T
    if cast_dtype is not None:   # emulate the kernel's bf16 operand cast
        patches = patches.astype(cast_dtype).astype(jnp.float32)
        w2 = w2.astype(cast_dtype).astype(jnp.float32)
    y = jnp.matmul(patches, w2, precision=jax.lax.Precision.HIGHEST) + conv_bias
    y = 0.5 * y * (1.0 + jax.lax.erf(y * jnp.float32(1.0 / math.sqrt(2.0))))
    m = y.mean(-1, keepdims=True)
    v = ((y - m) ** 2).mean(-1, keepdims=True)
    y = (y - m) / jnp.sqrt(v + eps) * ln_gamma + ln_beta
    return jnp.transpose(y.reshape(B, T_out, C_out), (0, 2, 1))


if __name__ == "__main__":
    # Small shapes consistent with the module's forward: (B, C_in, T) NCW.
    B, C_in, T = 2, 4, 16
    C_out, K, stride, padding = 32, 8, 4, 2

    key = jax.random.PRNGKey(0)
    kx, kw, kb, kg, kbeta = jax.random.split(key, 5)

    x = jax.random.normal(kx, (B, C_in, T), dtype=jnp.float32)
    fan_in = C_in * K
    bound = 1.0 / math.sqrt(fan_in)
    conv_weight = jax.random.uniform(kw, (C_out, C_in, K),
                                     minval=-bound, maxval=bound,
                                     dtype=jnp.float32)
    conv_bias = jax.random.uniform(kb, (C_out,),
                                   minval=-bound, maxval=bound,
                                   dtype=jnp.float32)
    ln_gamma = 1.0 + 0.1 * jax.random.normal(kg, (C_out,), dtype=jnp.float32)
    ln_beta = 0.1 * jax.random.normal(kbeta, (C_out,), dtype=jnp.float32)

    run_bf16 = jax.jit(functools.partial(
        encoder_block, kernel_size=K, stride=stride, padding=padding,
        compute_dtype=jnp.bfloat16))
    run_f32 = jax.jit(functools.partial(
        encoder_block, kernel_size=K, stride=stride, padding=padding,
        compute_dtype=jnp.float32))

    # Production path: bf16 matmul operands, f32 everything else.
    out = run_bf16(x, conv_weight, conv_bias, ln_gamma, ln_beta)
    jax.block_until_ready(out)

    T_out = (T + 2 * padding - K) // stride + 1
    assert out.shape == (B, C_out, T_out), out.shape

    ref_bf16 = _reference(x, conv_weight, conv_bias, ln_gamma, ln_beta,
                          kernel_size=K, stride=stride, padding=padding,
                          cast_dtype=jnp.bfloat16)
    err_bf16 = float(jnp.max(jnp.abs(out - ref_bf16)))
    assert jnp.allclose(out, ref_bf16, atol=5e-3, rtol=5e-3), err_bf16

    # Bit-faithful f32 path against the exact reference.
    out_f32 = run_f32(x, conv_weight, conv_bias, ln_gamma, ln_beta)
    jax.block_until_ready(out_f32)
    ref_f32 = _reference(x, conv_weight, conv_bias, ln_gamma, ln_beta,
                         kernel_size=K, stride=stride, padding=padding)
    err_f32 = float(jnp.max(jnp.abs(out_f32 - ref_f32)))
    assert jnp.allclose(out_f32, ref_f32, atol=5e-4, rtol=5e-4), err_f32

    print("KERNEL_OK")
</pallas_src>

<mosaic_0001>
module attributes {stable_mosaic.version = 11 : i64} {
  func.func @_encoder_block_kernel(%arg0: i32, %arg1: i32, %arg2: memref<1x16x128xbf16, #tpu.memory_space<vmem>>, %arg3: memref<1x16x128xbf16, #tpu.memory_space<vmem>>, %arg4: memref<32x32xbf16, #tpu.memory_space<vmem>>, %arg5: memref<32x3xf32, #tpu.memory_space<vmem>>, %arg6: memref<1x32x128xf32, #tpu.memory_space<vmem>>) attributes {dimension_semantics = [#tpu.dimension_semantics<parallel>, #tpu.dimension_semantics<parallel>], iteration_bounds = array<i64: 2, 1>, scalar_prefetch = 0 : i64, scratch_operands = 0 : i64, tpu.core_type = #tpu.core_type<tc>, window_params = [{transform_indices = @transform_0, window_bounds = array<i64: 1, 16, 128>}, {transform_indices = @transform_1, window_bounds = array<i64: 1, 16, 128>}, {pipeline_mode = #tpu.pipeline_mode<synchronous>, transform_indices = @transform_2, window_bounds = array<i64: 32, 32>}, {pipeline_mode = #tpu.pipeline_mode<synchronous>, transform_indices = @transform_3, window_bounds = array<i64: 32, 3>}, {transform_indices = @transform_4, window_bounds = array<i64: 1, 32, 128>}]} {
    %c0 = arith.constant 0 : index
    %c0_0 = arith.constant 0 : index
    %c0_1 = arith.constant 0 : index
    %0 = vector.load %arg2[%c0, %c0_0, %c0_1] : memref<1x16x128xbf16, #tpu.memory_space<vmem>>, vector<1x16x128xbf16>
    %1 = vector.shape_cast %0 : vector<1x16x128xbf16> to vector<16x128xbf16>
    %c0_2 = arith.constant 0 : index
    %c0_3 = arith.constant 0 : index
    %c0_4 = arith.constant 0 : index
    %2 = vector.load %arg3[%c0_2, %c0_3, %c0_4] : memref<1x16x128xbf16, #tpu.memory_space<vmem>>, vector<1x16x128xbf16>
    %3 = vector.shape_cast %2 : vector<1x16x128xbf16> to vector<16x128xbf16>
    %4 = tpu.concatenate %1, %3 in 1 : vector<16x128xbf16>, vector<16x128xbf16> -> vector<16x256xbf16>
    %5 = vector.extract_strided_slice %4 {offsets = [0, 0], sizes = [16, 128], strides = [1, 1]} : vector<16x256xbf16> to vector<16x128xbf16>
    %6 = vector.extract_strided_slice %4 {offsets = [0, 1], sizes = [16, 128], strides = [1, 1]} : vector<16x256xbf16> to vector<16x128xbf16>
    %7 = tpu.concatenate %5, %6 in 0 : vector<16x128xbf16>, vector<16x128xbf16> -> vector<32x128xbf16>
    %c0_5 = arith.constant 0 : index
    %c0_6 = arith.constant 0 : index
    %8 = vector.load %arg4[%c0_5, %c0_6] : memref<32x32xbf16, #tpu.memory_space<vmem>>, vector<32x32xbf16>
    %cst = arith.constant dense<0.000000e+00> : vector<32x128xf32>
    %9 = tpu.matmul %8, %7, %cst {dimension_numbers = #tpu.dot_dimension_numbers<[1], [0], [0], [1], [0, 0, 1, 1], [], []>} : vector<32x32xbf16>, vector<32x128xbf16>, vector<32x128xf32> -> vector<32x128xf32>
    %c0_7 = arith.constant 0 : index
    %c0_8 = arith.constant 0 : index
    %10 = vector.load %arg5[%c0_7, %c0_8] : memref<32x3xf32, #tpu.memory_space<vmem>>, vector<32x1xf32>
    %11 = vector.broadcast %10 : vector<32x1xf32> to vector<32x128xf32>
    %12 = arith.addf %9, %11 : vector<32x128xf32>
    %cst_9 = arith.constant 5.000000e-01 : f32
    %13 = vector.broadcast %cst_9 : f32 to vector<32x128xf32>
    %14 = arith.mulf %13, %12 : vector<32x128xf32>
    %cst_10 = arith.constant 0.707106769 : f32
    %15 = vector.broadcast %cst_10 : f32 to vector<32x128xf32>
    %16 = arith.mulf %12, %15 : vector<32x128xf32>
    %17 = math.erf %16 : vector<32x128xf32>
    %cst_11 = arith.constant 1.000000e+00 : f32
    %18 = vector.broadcast %cst_11 : f32 to vector<32x128xf32>
    %19 = arith.addf %18, %17 : vector<32x128xf32>
    %20 = arith.mulf %14, %19 : vector<32x128xf32>
    %cst_12 = arith.constant dense<0.000000e+00> : vector<128xf32>
    %21 = vector.multi_reduction <add>, %20, %cst_12 [0] : vector<32x128xf32> to vector<128xf32>
    %22 = vector.shape_cast %21 : vector<128xf32> to vector<1x128xf32>
    %cst_13 = arith.constant 3.125000e-02 : f32
    %23 = vector.broadcast %cst_13 : f32 to vector<1x128xf32>
    %24 = arith.mulf %22, %23 : vector<1x128xf32>
    %25 = arith.mulf %20, %20 : vector<32x128xf32>
    %cst_14 = arith.constant dense<0.000000e+00> : vector<128xf32>
    %26 = vector.multi_reduction <add>, %25, %cst_14 [0] : vector<32x128xf32> to vector<128xf32>
    %27 = vector.shape_cast %26 : vector<128xf32> to vector<1x128xf32>
    %cst_15 = arith.constant 3.125000e-02 : f32
    %28 = vector.broadcast %cst_15 : f32 to vector<1x128xf32>
    %29 = arith.mulf %27, %28 : vector<1x128xf32>
    %30 = arith.mulf %24, %24 : vector<1x128xf32>
    %31 = arith.subf %29, %30 : vector<1x128xf32>
    %cst_16 = arith.constant 0.000000e+00 : f32
    %32 = vector.broadcast %cst_16 : f32 to vector<1x128xf32>
    %33 = arith.maximumf %31, %32 : vector<1x128xf32>
    %34 = vector.broadcast %24 : vector<1x128xf32> to vector<32x128xf32>
    %35 = arith.subf %20, %34 : vector<32x128xf32>
    %cst_17 = arith.constant 9.99999974E-6 : f32
    %36 = vector.broadcast %cst_17 : f32 to vector<1x128xf32>
    %37 = arith.addf %33, %36 : vector<1x128xf32>
    %38 = math.rsqrt %37 : vector<1x128xf32>
    %39 = vector.broadcast %38 : vector<1x128xf32> to vector<32x128xf32>
    %40 = arith.mulf %35, %39 : vector<32x128xf32>
    %c0_18 = arith.constant 0 : index
    %c1 = arith.constant 1 : index
    %41 = vector.load %arg5[%c0_18, %c1] : memref<32x3xf32, #tpu.memory_space<vmem>>, vector<32x1xf32>
    %42 = vector.broadcast %41 : vector<32x1xf32> to vector<32x128xf32>
    %43 = arith.mulf %40, %42 : vector<32x128xf32>
    %c0_19 = arith.constant 0 : index
    %c2 = arith.constant 2 : index
    %44 = vector.load %arg5[%c0_19, %c2] : memref<32x3xf32, #tpu.memory_space<vmem>>, vector<32x1xf32>
    %45 = vector.broadcast %44 : vector<32x1xf32> to vector<32x128xf32>
    %46 = arith.addf %43, %45 : vector<32x128xf32>
    %c0_20 = arith.constant 0 : index
    %c0_21 = arith.constant 0 : index
    %c0_22 = arith.constant 0 : index
    %47 = vector.load %arg6[%c0_20, %c0_21, %c0_22] : memref<1x32x128xf32, #tpu.memory_space<vmem>>, vector<1x32x128xf32>
    %48 = vector.shape_cast %47 : vector<1x32x128xf32> to vector<32x128xf32>
    %49 = vector.shape_cast %46 : vector<32x128xf32> to vector<1x32x128xf32>
    tpu.vector_store %arg6[%c0_20, %c0_21, %c0_22], %49 {strides = array<i32>} : memref<1x32x128xf32, #tpu.memory_space<vmem>>, vector<1x32x128xf32>,
    return
  }
  func.func @transform_0(%arg0: i32, %arg1: i32) -> (i32, i32, i32) {
    %c0_i32 = arith.constant 0 : i32
    %c0_i32_0 = arith.constant 0 : i32
    return %arg0, %c0_i32, %arg1 : i32, i32, i32
  }
  func.func @transform_1(%arg0: i32, %arg1: i32) -> (i32, i32, i32) {
    %c1_i32 = arith.constant 1 : i32
    %0 = arith.addi %arg1, %c1_i32 : i32
    %c1_i32_0 = arith.constant 1 : i32
    %1 = arith.muli %0, %c1_i32_0 : i32
    %c0_i32 = arith.constant 0 : i32
    %c0_i32_1 = arith.constant 0 : i32
    return %arg0, %c0_i32, %1 : i32, i32, i32
  }
  func.func @transform_2(%arg0: i32, %arg1: i32) -> (i32, i32) {
    %c0_i32 = arith.constant 0 : i32
    %c0_i32_0 = arith.constant 0 : i32
    %c0_i32_1 = arith.constant 0 : i32
    return %c0_i32, %c0_i32_0 : i32, i32
  }
  func.func @transform_3(%arg0: i32, %arg1: i32) -> (i32, i32) {
    %c0_i32 = arith.constant 0 : i32
    %c0_i32_0 = arith.constant 0 : i32
    %c0_i32_1 = arith.constant 0 : i32
    return %c0_i32, %c0_i32_0 : i32, i32
  }
  func.func @transform_4(%arg0: i32, %arg1: i32) -> (i32, i32, i32) {
    %c0_i32 = arith.constant 0 : i32
    %c0_i32_0 = arith.constant 0 : i32
    return %arg0, %c0_i32, %arg1 : i32, i32, i32
  }
}

</mosaic_0001>

<bundles_post_ra>
// kernel: encoder_block.1
= control target key start
LH: loop header
LB: loop body
LE: loop exit
PB: predicated region body
PF: predicated region fallthrough
CT: control target
= control target key end

     0   :  { %s841_s15 = smov 0   ;;  %s843_s16 = smov 0   ;;  %s940_s0 = inlined_call_operand.vmem [shape: bf16[2,16,256], index: 0, kind: input, shape index: {}, may-alias: {0,1}]   ;;  %s941_s1 = inlined_call_operand.vmem [shape: bf16[2,16,256], index: 1, kind: input, shape index: {}, may-alias: {0,1}]   ;;  %s942_s2 = inlined_call_operand.vmem [shape: bf16[32,32], index: 2, kind: input, shape index: {}]   ;;  %s943_s3 = inlined_call_operand.vmem [shape: f32[32,3], index: 3, kind: input, shape index: {}]   ;;  %s944_s4 = inlined_call_operand.vmem [shape: f32[2,32,128], index: 4, kind: output, shape index: {}]  }
   0x1   :  { %s845_s17 = smov 0   ;;  %s847_s18 = smov 0  }
   0x2   :  { %s849_s19 = smov 0  }
   0x3 LB: > { %s26_s20 = sadd.s32 1, %s806_s18  ;;  %p42_p1 = scmp.ne.s32.totalorder %s798_s16, %s794_s15  ;;  %s810_s19 = sphi %s849_s19, %s14_s19   ;;  %s806_s18 = sphi %s847_s18, %s949_s18   ;;  %s802_s17 = sphi %s845_s17, %s948_s17   ;;  %s798_s16 = sphi %s843_s16, %s947_s16   ;;  %s794_s15 = sphi %s841_s15, %s946_s15  }
   0x4   : > { %p28_p0 = scmp.ge.s32.totalorder %s26_s20, 2  ;;  %p43_p2 = scmp.eq.s32.totalorder %s810_s19, 0 }
   0x5   : > { %s35_s23 = sadd.s32 1, %s798_s16  ;;  %p671_p5 = scmp.ge.s32.totalorder %s810_s19, 2 }
   0x6   : > { %s951_s20 = smov (%p28_p0, %s26_s20), 0  ;;  %p872_p3 = por %p43_p2, %p42_p1 }
   0x7   : > { %s30_s22 = ssub.s32 %s806_s18, %s951_s20  ;;  %174 = sbr.rel (%p671_p5) target bundleno = 22 (0x16), region = 24 }
   0x8   : > { %p33_p4 = scmp.eq.s32.totalorder %s30_s22, 0 }
   0xa   : > { %s880_s24 = scalar_select %p33_p4, %s798_s16, %s35_s23  }
   0xc   : > { %177 = sbr.rel (!%p872_p3) target bundleno = 17 (0x11), region = 28  ;;  %s179_s25 = sand.u32 (%p872_p3), 1, %s798_s16  }
   0xd   : > { %s693_s26 = sshll.u32 (%p872_p3), %s806_s18, 4  ;;  %s672_s27 = sshll.u32 (%p872_p3), %s179_s25, 3 }
   0xe   : > { %s185_s30 = scalar_lea.vmem (%p872_p3), %s940_s0, %s693_s26  ;;  %s181_s5 = scalar_lea.vmem (%p872_p3), [#allocation2], %s672_s27 }
   0xf   : > { %v202_v0 = vld [vmem:[%s185_s30] sm:$0xf] (%p872_p3)  ;;  %v204_v1 = vld [vmem:[%s185_s30 + $0x8] sm:$0xf] (%p872_p3) }
  0x10   : > { %203 = vst [vmem:[%s181_s5] sm:$0xf] (%p872_p3), %v202_v0  ;;  %205 = vst [vmem:[%s181_s5 + $0x4] sm:$0xf] (%p872_p3), %v204_v1 }
  0x11 PF: > { %233 = sbr.rel (!%p872_p3) target bundleno = 22 (0x16), region = 69  ;;  %s235_s6 = sand.u32 (%p872_p3), 1, %s798_s16  }
  0x12   : > { %s694_s7 = sshll.u32 (%p872_p3), %s806_s18, 4  ;;  %s675_s8 = sshll.u32 (%p872_p3), %s235_s6, 3 }
  0x13   : > { %s600_s11 = scalar_lea.vmem (%p872_p3), %s941_s1, %s694_s7  ;;  %s237_s12 = scalar_lea.vmem (%p872_p3), [#allocation3], %s675_s8 }
  0x14   : > { %v678_v2 = vld [vmem:[%s600_s11 + $0x4] sm:$0xf] (%p872_p3)  ;;  %v679_v3 = vld [vmem:[%s600_s11 + $0xc] sm:$0xf] (%p872_p3) }
  0x15   : > { %260 = vst [vmem:[%s237_s12] sm:$0xf] (%p872_p3), %v678_v2  ;;  %262 = vst [vmem:[%s237_s12 + $0x4] sm:$0xf] (%p872_p3), %v679_v3 }
  0x16 PF: > { %p680_p6 = scmp.ge.s32.totalorder %s810_s19, 1  ;;  %p289_p7 = scmp.lt.s32.totalorder %s810_s19, 3 }
  0x18   : > { %p290_p8 = pnand %p680_p6, %p289_p7 }
  0x19   : > { %s296_s13 = sand.u32 (!%p290_p8), 1, %s794_s15   ;;  %s812_s26 = smov (!%p290_p8), 127  }
  0x1a   : > { %293 = sbr.rel (%p290_p8) target bundleno = 432 (0x1b0), region = 110  ;;  %s681_s14 = sshll.u32 (!%p290_p8), %s296_s13, 3 }
  0x1b   : > { %s298_s23 = scalar_lea.vmem (!%p290_p8), [#allocation2], %s681_s14  ;;  %s305_s25 = scalar_lea.vmem (!%p290_p8), [#allocation3], %s681_s14 }
  0x1c   : > { %p336_p9 = scmp.lt.s32.totalorder (!%p290_p8), %s802_s17, 1 }
  0x1f   : > { %v760_v4 = vld [vmem:[%s942_s2] sm:$0xff]   ;;  %vm405_vm0 = vcmask 261120   ;;  %v759_v6 = vld [vmem:[%s305_s25] sm:$0xff]   ;;  %v813_v8 = vmov 0   ;;  %v372_v9 = vld [vmem:[%s943_s3 + $0x8] sm:$0xff]  ;;  %v814_v12 = vmov 1  }
  0x20   : > { %v758_v5 = vld [vmem:[%s298_s23] sm:$0xff]   ;;  %704 = vmatprep.mubr.msk.bf16.mxu0 %vm405_vm0, %v760_v4  ;;  %752 = vset.pattern.permute.xlu1 %v813_v8  ;;  %v373_v10 = vld [vmem:[%s943_s3 + $0x10] sm:$0xff]  ;;  %v374_v11 = vld [vmem:[%s943_s3 + $0x18] sm:$0xff]  ;;  %v815_v13 = vmov 2   ;;  %vm364_vm1 = vcmask 1039360   ;;  %s953_s17 = smov (!%p336_p9, %s802_s17), 1 }
  0x21   : > { %360 = vrot.lane.b32.xlu0 %v758_v5, %s812_s26  ;;  %v371_v7 = vld [vmem:[%s943_s3] sm:$0xff]  ;;  %v761_v17 = vld [vmem:[%s942_s2 + $0x8] sm:$0xff]   ;;  %s695_s10 = sshll.u32 %s953_s17, 5 }
  0x22   : > { %753 = vset.pattern.permute.xlu0 %v813_v8  ;;  %377 = vperm.xlu1 %752, %v371_v7   ;;  %s343_s13 = scalar_lea.vmem %s944_s4, %s695_s10 }
  0x25   : > { %362 = vrot.lane.b32.xlu0 %v759_v6, %s812_s26 }
  0x26   : > { %382 = vperm.xlu1 %752, %v372_v9  }
  0x29   : > { %387 = vperm.xlu0 %753, %v373_v10  }
  0x2a   : > { %392 = vperm.xlu1 %752, %v374_v11  }
  0x2d   : > { %755 = vset.pattern.permute.xlu0 %v814_v12 }
  0x2e   : > { %523 = vperm.xlu0 %755, %v372_v9   ;;  %754 = vset.pattern.permute.xlu1 %v814_v12 }
  0x2f   : > { %519 = vperm.xlu1 %754, %v371_v7  }
  0x32   : > { %756 = vset.pattern.permute.xlu0 %v815_v13 }
  0x33   : > { %539 = vperm.xlu0 %756, %v371_v7   ;;  %527 = vperm.xlu1 %754, %v373_v10  }
  0x37   : > { %551 = vperm.xlu0 %756, %v374_v11   ;;  %531 = vperm.xlu1 %754, %v374_v11  }
  0x3b   : > { %757 = vset.pattern.permute.xlu1 %v815_v13 }
  0x3c   : > { %543 = vperm.xlu1 %757, %v372_v9  }
  0x40   : > { %547 = vperm.xlu1 %757, %v373_v10  }
  0x93   : > { %v361_v14 = vpop.permute.xlu0 %360 }
  0x97   : > { %v363_v15 = vpop.permute.xlu0 %362 }
  0x98   : > { %v365_v16 = vsel %vm364_vm1, %v361_v14, %v363_v15 }
  0x99   : > { %700 = vmatprep.subr.bf16.mxu0 %v365_v16 }
  0x9a   : > { %701 = vmatpush3.bf16.msra.mxu0 %v365_v16 }
  0x9b   : > { %702 = vmatprep.subr.bf16.mxu0 %v758_v5 }
  0x9d   : > { %v378_v18 = vpop.permute.xlu1 %377 }
  0x9e   : > { %703 = vmatpush3.bf16.msra.mxu0 %v758_v5 }
  0xa1   : > { %705 = vmatmul.mubr.msk.bf16.vlgmr.msra.gmra.mxu0 %vm405_vm0, %v761_v17  ;;  %v383_v19 = vpop.permute.xlu1 %382 }
  0xa4   : > { %v388_v20 = vpop.permute.xlu0 %387 }
  0xa5   : > { %v393_v26 = vpop.permute.xlu1 %392 }
  0xa9   : > { %v524_v16 = vpop.permute.xlu0 %523 }
  0xaa   : > { %v520_v12 = vpop.permute.xlu1 %519 }
  0xae   : > { %v528_v15 = vpop.permute.xlu1 %527 }
  0xb2   : > { %v532_v17 = vpop.permute.xlu1 %531 }
 0x161   : > { %v706_v21 = vpop.f32.mrf.mxu0 }
 0x162   : > { %v455_v22 = vadd.f32 %v706_v21, %v388_v20 }
 0x163   : > { %v446_v23 = vpop.f32.mrf.mxu0 }
 0x164   : > { %v467_v24 = vmul.f32 0.70710677, %v455_v22  ;;  %v447_v25 = vadd.f32 %v446_v23, %v378_v18  ;;  %v463_v41 = vmul.f32 0.5, %v455_v22  ;;  %v544_v18 = vpop.permute.xlu1 %543 }
 0x165   : > { %v707_v27 = vpop.f32.mrf.mxu0 }
 0x166   : > { %v465_v28 = vmul.f32 0.70710677, %v447_v25  ;;  %v458_v29 = vadd.f32 %v707_v27, %v393_v26  ;;  %762 = verf.f32 %v467_v24  ;;  %v461_v39 = vmul.f32 0.5, %v447_v25 }
 0x167   : > { %v449_v30 = vpop.f32.mrf.mxu0 }
 0x168   : > { %764 = verf.f32 %v465_v28  ;;  %v468_v31 = vmul.f32 0.70710677, %v458_v29  ;;  %v450_v32 = vadd.f32 %v449_v30, %v383_v19  ;;  %v464_v47 = vmul.f32 0.5, %v458_v29  ;;  %v540_v19 = vpop.permute.xlu0 %539 }
 0x16a   : > { %766 = verf.f32 %v468_v31  ;;  %v466_v33 = vmul.f32 0.70710677, %v450_v32  ;;  %v462_v44 = vmul.f32 0.5, %v450_v32 }
 0x16c   : > { %768 = verf.f32 %v466_v33  ;;  %v548_v33 = vpop.permute.xlu1 %547 }
 0x173   : > { %v763_v34 = vpop.eup %762 }
 0x174   : > { %v475_v38 = vadd.f32 1.0, %v763_v34  ;;  %v552_v34 = vpop.permute.xlu0 %551 }
 0x175   : > { %v765_v35 = vpop.eup %764 }
 0x176   : > { %v473_v36 = vadd.f32 1.0, %v765_v35  ;;  %v479_v46 = vmul.f32 %v475_v38, %v463_v41 }
 0x177   : > { %v767_v37 = vpop.eup %766 }
 0x178   : > { %v477_v42 = vmul.f32 %v473_v36, %v461_v39  ;;  %v476_v43 = vadd.f32 1.0, %v767_v37  ;;  %v493_v53 = vmul.f32 %v479_v46, %v479_v46 }
 0x179   : > { %v769_v40 = vpop.eup %768 }
 0x17a   : > { %v474_v45 = vadd.f32 1.0, %v769_v40  ;;  %v491_v49 = vmul.f32 %v477_v42, %v477_v42  ;;  %v480_v50 = vmul.f32 %v476_v43, %v464_v47 }
 0x17c   : > { %v478_v48 = vmul.f32 %v474_v45, %v462_v44  ;;  %v494_v56 = vmul.f32 %v480_v50, %v480_v50 }
 0x17e   : > { %v481_v51 = vadd.f32 %v478_v48, %v477_v42  ;;  %v492_v52 = vmul.f32 %v478_v48, %v478_v48 }
 0x180   : > { %v482_v54 = vadd.f32 %v481_v51, %v479_v46  ;;  %v495_v55 = vadd.f32 %v492_v52, %v491_v49 }
 0x182   : > { %v483_v57 = vadd.f32 %v482_v54, %v480_v50  ;;  %v496_v58 = vadd.f32 %v495_v55, %v493_v53 }
 0x184   : > { %v484_v59 = vrot.slane %v483_v57, 4  ;;  %v497_v60 = vadd.f32 %v496_v58, %v494_v56 }
 0x186   : > { %v485_v61 = vadd.f32 %v484_v59, %v483_v57  ;;  %v498_v62 = vrot.slane %v497_v60, 4 }
 0x188   : > { %v486_v63 = vrot.slane %v485_v61, 2  ;;  %v499_v0 = vadd.f32 %v498_v62, %v497_v60 }
 0x18a   : > { %v487_v1 = vadd.f32 %v486_v63, %v485_v61  ;;  %v500_v2 = vrot.slane %v499_v0, 2 }
 0x18c   : > { %v488_v3 = vrot.slane %v487_v1, 1  ;;  %v501_v4 = vadd.f32 %v500_v2, %v499_v0 }
 0x18e   : > { %v502_v5 = vrot.slane %v501_v4, 1  ;;  %v489_v6 = vadd.f32 %v488_v3, %v487_v1 }
 0x190   : > { %v503_v7 = vadd.f32 %v502_v5, %v501_v4  ;;  %v490_v8 = vmul.f32 0.03125, %v489_v6 }
 0x192   : > { %v504_v9 = vmul.f32 0.03125, %v503_v7  ;;  %v505_v10 = vmul.f32 %v490_v8, %v490_v8  ;;  %v508_v20 = vsub.f32 %v477_v42, %v490_v8  ;;  %v510_v21 = vsub.f32 %v479_v46, %v490_v8 }
 0x193   : > { %v511_v22 = vsub.f32 %v480_v50, %v490_v8  ;;  %v509_v23 = vsub.f32 %v478_v48, %v490_v8 }
 0x194   : > { %v506_v11 = vsub.f32 %v504_v9, %v505_v10 }
 0x196   : > { %v507_v13 = vmax.f32 %v506_v11, 0.0 }
 0x198   : > { %v512_v14 = vadd.f32 1e-05, %v507_v13 }
 0x19a   : > { %770 = vrsqrt.f32 %v512_v14 }
 0x1a7   : > { %v771_v24 = vpop.eup %770 }
 0x1a8   : > { %v514_v25 = vmul.f32 %v771_v24, %v508_v20  ;;  %v516_v26 = vmul.f32 %v771_v24, %v510_v21  ;;  %v517_v27 = vmul.f32 %v771_v24, %v511_v22  ;;  %v515_v28 = vmul.f32 %v771_v24, %v509_v23 }
 0x1aa   : > { %v534_v29 = vmul.f32 %v520_v12, %v514_v25  ;;  %v536_v30 = vmul.f32 %v528_v15, %v516_v26  ;;  %v537_v31 = vmul.f32 %v532_v17, %v517_v27  ;;  %v535_v32 = vmul.f32 %v524_v16, %v515_v28 }
 0x1ac   : > { %v555_v35 = vadd.f32 %v544_v18, %v535_v32  ;;  %v554_v36 = vadd.f32 %v540_v19, %v534_v29  ;;  %v556_v37 = vadd.f32 %v548_v33, %v536_v30  ;;  %v557_v38 = vadd.f32 %v552_v34, %v537_v31 }
 0x1ae   : > { %559 = vst [vmem:[%s343_s13 + $0x8] sm:$0xff] %v555_v35  ;;  %558 = vst [vmem:[%s343_s13] sm:$0xff] %v554_v36 }
 0x1af   : > { %560 = vst [vmem:[%s343_s13 + $0x10] sm:$0xff] %v556_v37  ;;  %561 = vst [vmem:[%s343_s13 + $0x18] sm:$0xff] %v557_v38 }
 0x1b0 PF: > { %s14_s19 = sadd.s32 1, %s810_s19   ;;  %s946_s15 = smov %s798_s16 }
 0x1b1   : > { %p11_p10 = scmp.ge.s32.totalorder %s14_s19, 4   ;;  %s947_s16 = smov %s880_s24 }
 0x1b2   : > { %s948_s17 = smov %s806_s18  ;;  %s949_s18 = smov %s951_s20 }
 0x1b3   :  { %13 = sbr.rel (!%p11_p10) target bundleno = 3 (0x3), region = 161 }

</bundles_post_ra>
